<compile_context>
chip_gen: v7x
topology: tpu7x:2x2x1
jax: 0.10.0
libtpu: 0.0.40
codegen_flags: <defaults>
</compile_context>

<pallas_src>
import functools

import jax
import jax.numpy as jnp
from jax import lax
from jax.experimental import pallas as pl
from jax.experimental.pallas import tpu as pltpu


def _focal_loss_kernel(x_ref, t_ref, a_ref, out_ref, *, gamma, hw, tile_hw, needs_mask):
    x = x_ref[0].astype(jnp.float32)        # (C, T) logits, class axis on sublanes
    t = t_ref[0]                            # (1, T) int32 targets
    a = a_ref[...].astype(jnp.float32)      # (C, 1) per-class alpha

    # log-softmax over the class (sublane) axis, evaluated only at the target class.
    m = jnp.max(x, axis=0, keepdims=True)                            # (1, T)
    lse = jnp.log(jnp.sum(jnp.exp(x - m), axis=0, keepdims=True))    # (1, T)

    cls = lax.broadcasted_iota(jnp.int32, x.shape, 0)                # (C, T)
    eq = cls == t                                                    # (C, T) bool, computed once
    xt = jnp.sum(jnp.where(eq, x, 0.0), axis=0, keepdims=True)       # target logit (1, T)
    a_b = jnp.broadcast_to(a, x.shape)                               # hoisted (C, T) broadcast
    at = jnp.sum(jnp.where(eq, a_b, 0.0), axis=0, keepdims=True)     # alpha.gather(0, t)

    logpt = xt - m - lse                                             # log p_t (1, T)
    pt = jnp.exp(logpt)
    one_m_pt = 1.0 - pt
    g = float(gamma)
    if g == int(g) and int(g) >= 0:
        focal = lax.integer_pow(one_m_pt, int(g))                    # VPU multiplies
    else:
        focal = one_m_pt ** g                                        # EUP pow fallback
    loss = -1.0 * focal * (logpt * at)                               # (1, T)

    if needs_mask:
        # Only the last j-block has a ragged tail; only it pays for the mask.
        j = pl.program_id(1)
        last = pl.num_programs(1) - 1

        @pl.when(j == last)
        def _():
            col = j * tile_hw + lax.broadcasted_iota(jnp.int32, loss.shape, 1)
            masked = jnp.where(col < hw, loss, 0.0)   # padded lanes (stale VMEM) -> 0
            out_ref[...] = jnp.full(out_ref.shape, jnp.sum(masked), jnp.float32)

        @pl.when(j != last)
        def _():
            out_ref[...] = jnp.full(out_ref.shape, jnp.sum(loss), jnp.float32)
    else:
        out_ref[...] = jnp.full(out_ref.shape, jnp.sum(loss), jnp.float32)


def focal_loss(logits, target, gamma=2, alpha=None, size_average=True,
               block_bytes=4 * 1024 * 1024):
    """Matches FocalLoss.forward for (N, C, spatial...) logits and integer targets.

    Logits may be float32 or bfloat16 (streamed as-is; cast to f32 inside the kernel).
    """
    assert logits.ndim >= 3, "use the (N, C, spatial...) path"
    n, c = logits.shape[0], logits.shape[1]
    hw = 1
    for d in logits.shape[2:]:
        hw *= d
    # Free reshapes only (no HBM-traffic transpose): class stays the middle axis.
    x = logits.reshape(n, c, hw)
    t = target.reshape(n, 1, hw).astype(jnp.int32)

    if alpha is None:
        alpha_vec = jnp.ones((c, 1), jnp.float32)
    elif isinstance(alpha, (float, int)):
        assert c == 2, "scalar alpha only valid for 2 classes"
        alpha_vec = jnp.array([[float(alpha)], [1.0 - float(alpha)]], jnp.float32)
    else:
        alpha_vec = jnp.asarray(alpha, jnp.float32).reshape(c, 1)
        assert alpha_vec.shape[0] == c

    # --- Tile sizing with correct (padded-layout) VMEM accounting ---------------------
    itemsize = jnp.dtype(x.dtype).itemsize
    sublane = max(8, 32 // itemsize)               # f32: 8, bf16: 16, int8: 32
    padded_c = ((c + sublane - 1) // sublane) * sublane
    # Padded VMEM bytes per H*W position, double-buffered: logits tile + int32 target
    # tile (target pads 1 -> 8 sublanes).
    per_pos_vmem = 2 * (padded_c * itemsize + 8 * 4)
    vmem_budget = 24 * 1024 * 1024                 # stays under the 32 MiB limit below
    cap_vmem = vmem_budget // per_pos_vmem
    cap_traffic = max(128, block_bytes // (c * itemsize))
    cap = max(128, (min(cap_vmem, cap_traffic) // 128) * 128)
    tile_hw = hw if hw <= cap else cap
    grid_j = pl.cdiv(hw, tile_hw)

    # v7x has 2 TensorCores: make sure a (1, 1) grid becomes at least 2 parallel steps.
    if n == 1 and grid_j == 1 and hw > 128:
        half = (hw + 1) // 2
        tile_hw = ((half + 127) // 128) * 128
        grid_j = pl.cdiv(hw, tile_hw)

    needs_mask = (hw % tile_hw) != 0
    grid = (n, grid_j)

    partials = pl.pallas_call(
        functools.partial(_focal_loss_kernel, gamma=gamma, hw=hw,
                          tile_hw=tile_hw, needs_mask=needs_mask),
        out_shape=jax.ShapeDtypeStruct((n, grid_j, 1, 128), jnp.float32),
        grid_spec=pltpu.PrefetchScalarGridSpec(
            num_scalar_prefetch=0,
            grid=grid,
            in_specs=[
                pl.BlockSpec((1, c, tile_hw), lambda i, j: (i, 0, j)),  # logits tile
                pl.BlockSpec((1, 1, tile_hw), lambda i, j: (i, 0, j)),  # target tile
                pl.BlockSpec((c, 1), lambda i, j: (0, 0)),              # alpha (replicated)
            ],
            out_specs=pl.BlockSpec((1, 1, 1, 128), lambda i, j: (i, j, 0, 0)),
        ),
        compiler_params=pltpu.CompilerParams(
            dimension_semantics=("parallel", "parallel"),
            vmem_limit_bytes=32 * 1024 * 1024),
    )(x, t, alpha_vec)

    total = jnp.sum(partials[:, :, 0, 0])
    if size_average:
        return total / jnp.float32(n * hw)
    return total


def _ref_focal_loss(logits, target, gamma, alpha, size_average):
    """Pure-JAX reference mirroring the PyTorch forward."""
    n, c = logits.shape[0], logits.shape[1]
    hw = 1
    for d in logits.shape[2:]:
        hw *= d
    xr = jnp.transpose(logits.reshape(n, c, hw), (0, 2, 1)).reshape(-1, c)
    xr = xr.astype(jnp.float32)
    tr = target.reshape(-1)
    logp = jax.nn.log_softmax(xr, axis=1)
    logpt = jnp.take_along_axis(logp, tr[:, None], axis=1)[:, 0]
    pt = jnp.exp(logpt)
    if alpha is not None:
        if isinstance(alpha, (float, int)):
            av = jnp.array([float(alpha), 1.0 - float(alpha)], jnp.float32)
        else:
            av = jnp.asarray(alpha, jnp.float32)
        logpt = logpt * av[tr]
    loss = -1.0 * (1.0 - pt) ** gamma * logpt
    return jnp.mean(loss) if size_average else jnp.sum(loss)


if __name__ == "__main__":
    key = jax.random.PRNGKey(0)
    k1, k2 = jax.random.split(key)
    N, C, H, W = 2, 4, 16, 16
    logits = jax.random.normal(k1, (N, C, H, W), jnp.float32)
    target = jax.random.randint(k2, (N, H, W), 0, C, jnp.int32)
    alpha = [0.1, 0.2, 0.3, 0.4]

    # 1) f32, per-class alpha, even tiling.
    out = focal_loss(logits, target, gamma=2, alpha=alpha, size_average=True)
    jax.block_until_ready(out)
    ref = _ref_focal_loss(logits, target, 2, alpha, True)
    assert jnp.allclose(out, ref, rtol=1e-5, atol=1e-6), (out, ref)

    # 2) Ragged H*W tail + alpha=None, tiny block to exercise the masked last-block path
    #    and the N==1 grid split.
    H2, W2 = 9, 17
    lg2 = jax.random.normal(jax.random.PRNGKey(1), (1, C, H2, W2), jnp.float32)
    tg2 = jax.random.randint(jax.random.PRNGKey(2), (1, H2, W2), 0, C, jnp.int32)
    out2 = focal_loss(lg2, tg2, gamma=2, alpha=None, size_average=True, block_bytes=2048)
    jax.block_until_ready(out2)
    ref2 = _ref_focal_loss(lg2, tg2, 2, None, True)
    assert jnp.allclose(out2, ref2, rtol=1e-5, atol=1e-6), (out2, ref2)

    # 3) bf16 logits streamed without wrapper upcast (halves dominant HBM traffic).
    out3 = focal_loss(logits.astype(jnp.bfloat16), target, gamma=2, alpha=alpha)
    jax.block_until_ready(out3)
    ref3 = _ref_focal_loss(logits.astype(jnp.bfloat16), target, 2, alpha, True)
    assert jnp.allclose(out3, ref3, rtol=5e-2, atol=1e-3), (out3, ref3)

    print("KERNEL_OK")
</pallas_src>

<mosaic_0001>
module attributes {stable_mosaic.version = 11 : i64} {
  func.func @_focal_loss_kernel(%arg0: i32, %arg1: i32, %arg2: memref<1x4x256xf32, #tpu.memory_space<vmem>>, %arg3: memref<1x1x256xi32, #tpu.memory_space<vmem>>, %arg4: memref<4x1xf32, #tpu.memory_space<vmem>>, %arg5: memref<1x1x1x128xf32, #tpu.memory_space<vmem>>) attributes {dimension_semantics = [#tpu.dimension_semantics<parallel>, #tpu.dimension_semantics<parallel>], iteration_bounds = array<i64: 2, 1>, scalar_prefetch = 0 : i64, scratch_operands = 0 : i64, tpu.core_type = #tpu.core_type<tc>, window_params = [{transform_indices = @transform_0, window_bounds = array<i64: 1, 4, 256>}, {transform_indices = @transform_1, window_bounds = array<i64: 1, 1, 256>}, {pipeline_mode = #tpu.pipeline_mode<synchronous>, transform_indices = @transform_2, window_bounds = array<i64: 4, 1>}, {transform_indices = @transform_3, window_bounds = array<i64: 1, 1, 1, 128>}]} {
    %c0 = arith.constant 0 : index
    %c0_0 = arith.constant 0 : index
    %c0_1 = arith.constant 0 : index
    %0 = vector.load %arg2[%c0, %c0_0, %c0_1] : memref<1x4x256xf32, #tpu.memory_space<vmem>>, vector<1x4x256xf32>
    %1 = vector.shape_cast %0 : vector<1x4x256xf32> to vector<4x256xf32>
    %c0_2 = arith.constant 0 : index
    %c0_3 = arith.constant 0 : index
    %c0_4 = arith.constant 0 : index
    %2 = vector.load %arg3[%c0_2, %c0_3, %c0_4] : memref<1x1x256xi32, #tpu.memory_space<vmem>>, vector<1x1x256xi32>
    %3 = vector.shape_cast %2 : vector<1x1x256xi32> to vector<1x256xi32>
    %c0_5 = arith.constant 0 : index
    %c0_6 = arith.constant 0 : index
    %4 = vector.load %arg4[%c0_5, %c0_6] : memref<4x1xf32, #tpu.memory_space<vmem>>, vector<4x1xf32>
    %cst = arith.constant dense<0xFF800000> : vector<256xf32>
    %5 = vector.multi_reduction <maximumf>, %1, %cst [0] : vector<4x256xf32> to vector<256xf32>
    %6 = vector.shape_cast %5 : vector<256xf32> to vector<1x256xf32>
    %7 = vector.broadcast %6 : vector<1x256xf32> to vector<4x256xf32>
    %8 = arith.subf %1, %7 : vector<4x256xf32>
    %9 = math.exp %8 : vector<4x256xf32>
    %cst_7 = arith.constant dense<0.000000e+00> : vector<256xf32>
    %10 = vector.multi_reduction <add>, %9, %cst_7 [0] : vector<4x256xf32> to vector<256xf32>
    %11 = vector.shape_cast %10 : vector<256xf32> to vector<1x256xf32>
    %12 = math.log %11 : vector<1x256xf32>
    %13 = tpu.iota {dimensions = array<i32: 0>} : vector<4x256xi32>
    %14 = vector.broadcast %3 : vector<1x256xi32> to vector<4x256xi32>
    %15 = arith.cmpi eq, %13, %14 : vector<4x256xi32>
    %cst_8 = arith.constant 0.000000e+00 : f32
    %16 = vector.broadcast %cst_8 : f32 to vector<4x256xf32>
    %17 = arith.select %15, %1, %16 : vector<4x256xi1>, vector<4x256xf32>
    %cst_9 = arith.constant dense<0.000000e+00> : vector<256xf32>
    %18 = vector.multi_reduction <add>, %17, %cst_9 [0] : vector<4x256xf32> to vector<256xf32>
    %19 = vector.shape_cast %18 : vector<256xf32> to vector<1x256xf32>
    %20 = vector.shape_cast %4 : vector<4x1xf32> to vector<4x1xf32>
    %21 = vector.broadcast %20 : vector<4x1xf32> to vector<4x256xf32>
    %cst_10 = arith.constant 0.000000e+00 : f32
    %22 = vector.broadcast %cst_10 : f32 to vector<4x256xf32>
    %23 = arith.select %15, %21, %22 : vector<4x256xi1>, vector<4x256xf32>
    %cst_11 = arith.constant dense<0.000000e+00> : vector<256xf32>
    %24 = vector.multi_reduction <add>, %23, %cst_11 [0] : vector<4x256xf32> to vector<256xf32>
    %25 = vector.shape_cast %24 : vector<256xf32> to vector<1x256xf32>
    %26 = arith.subf %19, %6 : vector<1x256xf32>
    %27 = arith.subf %26, %12 : vector<1x256xf32>
    %28 = math.exp %27 : vector<1x256xf32>
    %cst_12 = arith.constant 1.000000e+00 : f32
    %29 = vector.broadcast %cst_12 : f32 to vector<1x256xf32>
    %30 = arith.subf %29, %28 : vector<1x256xf32>
    %31 = arith.mulf %30, %30 : vector<1x256xf32>
    %cst_13 = arith.constant -1.000000e+00 : f32
    %32 = vector.broadcast %cst_13 : f32 to vector<1x256xf32>
    %33 = arith.mulf %32, %31 : vector<1x256xf32>
    %34 = arith.mulf %27, %25 : vector<1x256xf32>
    %35 = arith.mulf %33, %34 : vector<1x256xf32>
    %36 = vector.shape_cast %35 : vector<1x256xf32> to vector<1x1x256xf32>
    %cst_14 = arith.constant dense<0.000000e+00> : vector<1xf32>
    %37 = vector.multi_reduction <add>, %36, %cst_14 [1, 2] : vector<1x1x256xf32> to vector<1xf32>
    %38 = vector.shape_cast %37 : vector<1xf32> to vector<1x1x1xf32>
    %39 = vector.extract %38[0, 0, 0] : f32 from vector<1x1x1xf32>
    %40 = vector.broadcast %39 : f32 to vector<1x1x1x128xf32>
    %c0_15 = arith.constant 0 : index
    %c0_16 = arith.constant 0 : index
    %c0_17 = arith.constant 0 : index
    %c0_18 = arith.constant 0 : index
    %41 = vector.load %arg5[%c0_15, %c0_16, %c0_17, %c0_18] : memref<1x1x1x128xf32, #tpu.memory_space<vmem>>, vector<1x1x1x128xf32>
    tpu.vector_store %arg5[%c0_15, %c0_16, %c0_17, %c0_18], %40 {strides = array<i32>} : memref<1x1x1x128xf32, #tpu.memory_space<vmem>>, vector<1x1x1x128xf32>,
    return
  }
  func.func @transform_0(%arg0: i32, %arg1: i32) -> (i32, i32, i32) {
    %c0_i32 = arith.constant 0 : i32
    %c0_i32_0 = arith.constant 0 : i32
    return %arg0, %c0_i32, %arg1 : i32, i32, i32
  }
  func.func @transform_1(%arg0: i32, %arg1: i32) -> (i32, i32, i32) {
    %c0_i32 = arith.constant 0 : i32
    %c0_i32_0 = arith.constant 0 : i32
    return %arg0, %c0_i32, %arg1 : i32, i32, i32
  }
  func.func @transform_2(%arg0: i32, %arg1: i32) -> (i32, i32) {
    %c0_i32 = arith.constant 0 : i32
    %c0_i32_0 = arith.constant 0 : i32
    %c0_i32_1 = arith.constant 0 : i32
    return %c0_i32, %c0_i32_0 : i32, i32
  }
  func.func @transform_3(%arg0: i32, %arg1: i32) -> (i32, i32, i32, i32) {
    %c0_i32 = arith.constant 0 : i32
    %c0_i32_0 = arith.constant 0 : i32
    %c0_i32_1 = arith.constant 0 : i32
    return %arg0, %arg1, %c0_i32, %c0_i32_0 : i32, i32, i32, i32
  }
}

</mosaic_0001>

<bundles_post_ra>
// kernel: tpu_custom_call.1
= control target key start
LH: loop header
LB: loop body
LE: loop exit
PB: predicated region body
PF: predicated region fallthrough
CT: control target
= control target key end

     0   :  { %8 = vsyncpa [#allocation3], 0  ;;  %s897_s0 = inlined_call_operand.hbm [shape: f32[2,4,256], index: 0, kind: input, shape index: {}]   ;;  %s898_s1 = inlined_call_operand.vmem [shape: s32[2,1,256], index: 1, kind: input, shape index: {}]   ;;  %s899_s2 = inlined_call_operand.vmem [shape: f32[4,1], index: 2, kind: input, shape index: {}]   ;;  %s900_s3 = inlined_call_operand.hbm [shape: f32[2,1,1,128], index: 3, kind: output, shape index: {}]  }
   0x1   :  { %10 = vsyncpa [#allocation3 + $0x1], 0 }
   0x2   :  { %11 = vsyncpa [#allocation4], 0 }
   0x3   :  { %13 = vsyncpa [#allocation4 + $0x1], 0  ;;  %s704_s12 = smov 0   ;;  %s706_s13 = smov 0  }
   0x4   :  { %s708_s14 = smov 0   ;;  %s710_s15 = smov 0  }
   0x5   :  { %s712_s16 = smov 0   ;;  %s714_s17 = smov 0  }
   0x6 LB: > { %s476_s18 = sadd.s32 4294967295, %s679_s17   ;;  %s477_s19 = sadd.s32 4294967294, %s679_s17   ;;  %s679_s17 = sphi %s714_s17, %s19_s17   ;;  %s675_s16 = sphi %s712_s16, %s916_s16   ;;  %s671_s15 = sphi %s710_s15, %s915_s15   ;;  %s667_s14 = sphi %s708_s14, %s914_s14   ;;  %s663_s13 = sphi %s706_s13, %s913_s13   ;;  %s659_s12 = sphi %s704_s12, %s912_s12  }
   0x7   : > { %s31_s20 = sadd.s32 1, %s675_s16  ;;  %s40_s21 = sadd.s32 1, %s667_s14 }
   0x8   : > { %p33_p0 = scmp.ge.s32.totalorder %s31_s20, 2  ;;  %p47_p1 = scmp.ne.s32.totalorder %s667_s14, %s663_s13 }
   0x9   : > { %p48_p2 = scmp.eq.s32.totalorder %s679_s17, 0  ;;  %p53_p3 = scmp.ne.s32.totalorder %s663_s13, %s659_s12 }
   0xa   : > { %s918_s20 = smov (%p33_p0, %s31_s20), 0  ;;  %p54_p5 = scmp.eq.s32.totalorder %s476_s18, 0 }
   0xb   : > { %p745_p4 = por %p48_p2, %p47_p1  ;;  %s35_s23 = ssub.s32 %s675_s16, %s918_s20 }
   0xc   : > { %p128_p6 = scmp.eq.s32.totalorder %s476_s18, 1  ;;  %p38_p7 = scmp.eq.s32.totalorder %s35_s23, 0 }
   0xd   : > { %p751_p8 = por %p54_p5, %p53_p3  ;;  %p134_p10 = scmp.eq.s32.totalorder %s477_s19, 1 }
   0xe   : > { %p755_p9 = por %p128_p6, %p47_p1  ;;  %p504_p13 = scmp.lt.s32.totalorder %s679_s17, 2 }
   0xf   : > { %s760_s26 = scalar_select %p38_p7, %s667_s14, %s40_s21  }
  0x10   : > { %s904_s25 = scalar_select %p755_p9, 1, 0 }
  0x11   : > { %p762_p11 = por %p134_p10, %p53_p3  ;;  %s157_s28 = sand.u32 1, %s667_s14  }
  0x12   : > { %s480_s29 = sshll.u32 %s157_s28, 3  ;;  %s489_s30 = sshll.u32 %s675_s16, 7 }
  0x13   : > { %s905_s27 = scalar_select %p762_p11, 1, 0 }
  0x14   : > { %s773_s6 = scalar_lea.hbm %s897_s0, %s489_s30  ;;  %s161_s7 = scalar_lea.vmem [#allocation2], %s480_s29 }
  0x15   : > { %s171_s8 = sshll.u32 %s161_s7, 4  ;;  %p779_p0 = pnand %p504_p13, %p745_p4  ;;  %s775_s8 = int_to_ptr.vmem [resolvable:$true] %s171_s8 }
  0x16   : > { %s158_s10 = scalar_lea.sflag [#allocation3], %s157_s28  ;;  %s567_s11 = scalar_lea.hbm %s773_s6, 128 }
  0x17   : > { %p568_p3 = scmp.ne.s32.totalorder %s773_s6, %s567_s11  ;;  %p569_p5 = pneg %p779_p0 }
  0x18   : > { %s572_s21 = scalar_lea.hbm %s897_s0, 256  ;;  %p573_p4 = scmp.lt.u32.totalorder %s773_s6, %s897_s0 }
  0x19   : > { %p570_p6 = pnand %p569_p5, %p568_p3  ;;  %p574_p10 = scmp.lt.u32.totalorder %s572_s21, %s567_s11 }
  0x1a   : > { %p576_p12 = scmp.lt.u32.totalorder %s567_s11, %s773_s6 }
  0x1b   : > { %p571_p7 = pneg %p570_p6  ;;  %p575_p13 = por %p574_p10, %p573_p4 }
  0x1d   : > { %p577_p1 = por %p576_p12, %p575_p13 }
  0x1f   : > { %p578_p2 = pnand %p577_p1, %p571_p7 }
  0x21   : > { %581 = shalt.err (!%p578_p2)
}
  0x22   : > { %s582_s28 = scalar_lea.vmem %s775_s8, 128  ;;  %s681_s29 = smov [#allocation2]  }
  0x23   : > { %p583_p3 = scmp.ne.s32.totalorder %s775_s8, %s582_s28  ;;  %s587_s30 = sshll.u32 %s681_s29, 4  ;;  %s588_s30 = int_to_ptr.vmem [resolvable:$false] %s587_s30 }
  0x24   : > { %s589_s4 = scalar_lea.vmem %s588_s30, 256  ;;  %p590_p9 = scmp.lt.s32.totalorder %s775_s8, %s588_s30 }
  0x25   : > { %p585_p6 = pnand %p583_p3, %p569_p5  ;;  %p591_p4 = scmp.lt.s32.totalorder %s589_s4, %s582_s28 }
  0x27   : > { %p586_p11 = pneg %p585_p6  ;;  %p592_p10 = por %p591_p4, %p590_p9 }
  0x29   : > { %p593_p12 = pnand %p592_p10, %p586_p11 }
  0x2b   : > { %596 = shalt.err (!%p593_p12)
}
  0x2c   : > { %499 = dma.hbm_to_vmem [thread:$0]  (!%p779_p0), %s773_s6, 128, %s775_s8, %s158_s10  }
  0x2d   : > { %p907_p1 = scmp.lt.s32.totalorder %s679_s17, 3  ;;  %p908_p2 = scmp.ge.s32.totalorder %s679_s17, 1 }
  0x2f   : > { %p189_p5 = pnand %p908_p2, %p907_p1 }
  0x30   : > { %s815_s5 = sand.u32 (!%p189_p5), 1, %s663_s13  }
  0x31   : > { %192 = sbr.rel (%p189_p5) target bundleno = 427 (0x1ab), region = 32  ;;  %s484_s7 = sshll.u32 (!%p189_p5), %s815_s5, 3 }
  0x32   : > { %s195_s11 = scalar_lea.sflag (!%p189_p5), [#allocation3], %s815_s5  ;;  %s198_s18 = scalar_lea.vmem (!%p189_p5), [#allocation2], %s484_s7 }
  0x38   : > { %650 = dma.done.wait (%p751_p8), %s195_s11, 128  }
  0x39   : > { %652 = vsyncadd (%p751_p8), %s195_s11, 4294967168  ;;  %v682_v0 = vmov 0   ;;  %v240_v1 = vld [vmem:[%s899_s2] sm:$0xf]  ;;  %vm244_vm0 = vcmask 1043456   ;;  %p230_p8 = scmp.lt.s32.totalorder %s671_s15, 1  ;;  %v287_v21 = vlaneseq }
  0x3a   : > { %555 = vset.pattern.permute.xlu0 %v682_v0  ;;  %v238_v2 = vld [vmem:[%s198_s18] sm:$0xff]  ;;  %vm354_vm3 = vcmask 1040384   ;;  %s227_s22 = scalar_lea.vmem [#allocation5], %s815_s5  ;;  %s486_s28 = sshll.u32 %s671_s15, 4 }
  0x3b   : > { %317 = vperm.xlu0 %555, %v240_v1   ;;  %v242_v3 = vcombine.high %v238_v2, %v238_v2  ;;  %v245_v4 = vsel %vm244_vm0, %v238_v2, -inf  ;;  %s231_s24 = scalar_select %p230_p8, %s671_s15, 1  ;;  %v288_v23 = vshrl.u32 %v287_v21, 7 }
  0x3c   : > { %v246_v6 = vrot.slane %v245_v4, 4  ;;  %s383_s23 = sshll.u32 %s227_s22, 4  ;;  %s850_s7 = scalar_lea.hbm %s900_s3, %s486_s28  ;;  %s845_s23 = int_to_ptr.vmem [resolvable:$true] %s383_s23 }
  0x3d   : > { %v252_v5 = vsel %vm244_vm0, %v242_v3, -inf  ;;  %s485_s9 = sshll.u32 %s231_s24, 1  ;;  %v291_v25 = vsub.s32 0, %v288_v23  ;;  %v295_v26 = vsub.s32 1, %v288_v23  ;;  %s370_s11 = scalar_lea.sflag [#allocation4], %s815_s5 }
  0x3e   : > { %v253_v7 = vrot.slane %v252_v5, 4  ;;  %v247_v8 = vmax.f32 %v245_v4, %v246_v6  ;;  %s236_s21 = scalar_lea.vmem %s898_s1, %s485_s9  ;;  %s597_s18 = scalar_lea.vmem %s845_s23, 16 }
  0x3f   : > { %v239_v27 = vld [vmem:[%s236_s21] sm:$0x3]  ;;  %p598_p9 = scmp.ne.s32.totalorder %s845_s23, %s597_s18  ;;  %p909_p11 = scmp.ne.s32.totalorder %s904_s25, 0 }
  0x40   : > { %v254_v9 = vmax.f32 %v252_v5, %v253_v7  ;;  %v248_v10 = vrot.slane %v247_v8, 2  ;;  %v292_v30 = vrot.slane %v239_v27, %v291_v25  ;;  %v296_v32 = vrot.slane %v239_v27, %v295_v26  ;;  %s683_s15 = smov [#allocation5]  }
  0x41   : > { %p599_p0 = pnand %p598_p9, %p909_p11  ;;  %s601_s6 = sshll.u32 %s683_s15, 4  ;;  %s602_s6 = int_to_ptr.vmem [resolvable:$false] %s601_s6 }
  0x42   : > { %v255_v11 = vrot.slane %v254_v9, 2  ;;  %v249_v12 = vmax.f32 %v247_v8, %v248_v10  ;;  %vm297_vm1 = vcmp.eq.s32.totalorder %v288_v23, %v292_v30  ;;  %vm298_vm2 = vcmp.eq.s32.totalorder %v288_v23, %v296_v32  ;;  %s603_s8 = scalar_lea.vmem %s602_s6, 32  ;;  %p604_p13 = scmp.lt.s32.totalorder %s845_s23, %s602_s6 }
  0x43   : > { %v299_v36 = vsel %vm297_vm1, %v238_v2, 0.0  ;;  %v300_v37 = vsel %vm298_vm2, %v242_v3, 0.0  ;;  %p600_p7 = pneg %p599_p0  ;;  %p605_p3 = scmp.lt.s32.totalorder %s603_s8, %s597_s18 }
  0x44   : > { %v256_v13 = vmax.f32 %v254_v9, %v255_v11  ;;  %v250_v14 = vrot.slane %v249_v12, 1  ;;  %v301_v40 = vsel %vm244_vm0, %v299_v36, 0.0  ;;  %v308_v41 = vsel %vm244_vm0, %v300_v37, 0.0 }
  0x45   : > { %v302_v43 = vrot.slane %v301_v40, 4  ;;  %v309_v45 = vrot.slane %v308_v41, 4  ;;  %p606_p6 = por %p605_p3, %p604_p13 }
  0x46   : > { %v257_v15 = vrot.slane %v256_v13, 1  ;;  %v251_v16 = vmax.f32 %v249_v12, %v250_v14 }
  0x47   : > { %v303_v47 = vadd.f32 %v302_v43, %v301_v40  ;;  %v310_v49 = vadd.f32 %v309_v45, %v308_v41  ;;  %p607_p4 = pnand %p606_p6, %p600_p7 }
  0x48   : > { %v258_v17 = vmax.f32 %v256_v13, %v257_v15 }
  0x49   : > { %v304_v51 = vrot.slane %v303_v47, 2  ;;  %v311_v53 = vrot.slane %v310_v49, 2 }
  0x4a   : > { %v261_v18 = vcombine.low %v251_v16, %v258_v17 }
  0x4b   : > { %v305_v54 = vadd.f32 %v304_v51, %v303_v47  ;;  %v312_v55 = vadd.f32 %v311_v53, %v310_v49 }
  0x4c   : > { %v263_v19 = vsub.f32 %v238_v2, %v261_v18 }
  0x4d   : > { %v306_v56 = vrot.slane %v305_v54, 1  ;;  %v313_v57 = vrot.slane %v312_v55, 1 }
  0x4e   : > { %v264_v20 = vmul.f32 1.442695, %v263_v19 }
  0x4f   : > { %v307_v58 = vadd.f32 %v306_v56, %v305_v54  ;;  %v314_v60 = vadd.f32 %v313_v57, %v312_v55 }
  0x50   : > { %557 = vpow2.f32 %v264_v20 }
  0x51   : > { %v336_v63 = vsub.f32 %v307_v58, %v251_v16  ;;  %v337_v1 = vsub.f32 %v314_v60, %v258_v17 }
  0x5a   : > { %v558_v22 = vpop.eup %557 }
  0x5b   : > { %v267_v24 = vcombine.high %v558_v22, %v558_v22  ;;  %v269_v28 = vsel %vm244_vm0, %v558_v22, 0.0 }
  0x5c   : > { %v270_v31 = vrot.slane %v269_v28, 4 }
  0x5d   : > { %v276_v29 = vsel %vm244_vm0, %v267_v24, 0.0 }
  0x5e   : > { %v277_v33 = vrot.slane %v276_v29, 4  ;;  %v271_v34 = vadd.f32 %v270_v31, %v269_v28 }
  0x60   : > { %v278_v35 = vadd.f32 %v277_v33, %v276_v29  ;;  %v272_v38 = vrot.slane %v271_v34, 2 }
  0x62   : > { %v279_v39 = vrot.slane %v278_v35, 2  ;;  %v273_v42 = vadd.f32 %v272_v38, %v271_v34 }
  0x64   : > { %v280_v44 = vadd.f32 %v279_v39, %v278_v35  ;;  %v274_v46 = vrot.slane %v273_v42, 1 }
  0x66   : > { %v281_v48 = vrot.slane %v280_v44, 1  ;;  %v275_v50 = vadd.f32 %v274_v46, %v273_v42 }
  0x68   : > { %v282_v52 = vadd.f32 %v281_v48, %v280_v44  ;;  %559 = vlog2.f32 %v275_v50 }
  0x6a   : > { %561 = vlog2.f32 %v282_v52 }
  0x72   : > { %v560_v59 = vpop.eup %559 }
  0x73   : > { %v284_v62 = vmul.f32 0.6931472, %v560_v59 }
  0x74   : > { %v562_v61 = vpop.eup %561 }
  0x75   : > { %v286_v0 = vmul.f32 0.6931472, %v562_v61  ;;  %v338_v2 = vsub.f32 %v336_v63, %v284_v62 }
  0x77   : > { %v339_v3 = vsub.f32 %v337_v1, %v286_v0  ;;  %v340_v4 = vmul.f32 1.442695, %v338_v2 }
  0x79   : > { %v342_v5 = vmul.f32 1.442695, %v339_v3  ;;  %563 = vpow2.f32 %v340_v4 }
  0x7b   : > { %565 = vpow2.f32 %v342_v5 }
  0x83   : > { %v564_v7 = vpop.eup %563 }
  0x84   : > { %v344_v17 = vsub.f32 1.0, %v564_v7 }
  0x85   : > { %v566_v10 = vpop.eup %565 }
  0x86   : > { %v345_v18 = vsub.f32 1.0, %v566_v10  ;;  %v346_v24 = vmul.f32 %v344_v17, %v344_v17 }
  0x88   : > { %v347_v25 = vmul.f32 %v345_v18, %v345_v18  ;;  %v348_v29 = vmul.f32 -1.0, %v346_v24 }
  0x8a   : > { %v349_v30 = vmul.f32 -1.0, %v347_v25 }
  0xba   : > { %v318_v6 = vpop.permute.xlu0 %317 }
  0xbb   : > { %v320_v8 = vsel %vm297_vm1, %v318_v6, 0.0  ;;  %v321_v9 = vsel %vm298_vm2, %v318_v6, 0.0 }
  0xbc   : > { %v322_v11 = vsel %vm244_vm0, %v320_v8, 0.0  ;;  %v329_v12 = vsel %vm244_vm0, %v321_v9, 0.0 }
  0xbd   : > { %v323_v13 = vrot.slane %v322_v11, 4  ;;  %v330_v14 = vrot.slane %v329_v12, 4 }
  0xbf   : > { %v324_v15 = vadd.f32 %v323_v13, %v322_v11  ;;  %v331_v16 = vadd.f32 %v330_v14, %v329_v12 }
  0xc1   : > { %v325_v19 = vrot.slane %v324_v15, 2  ;;  %v332_v20 = vrot.slane %v331_v16, 2 }
  0xc3   : > { %v326_v21 = vadd.f32 %v325_v19, %v324_v15  ;;  %v333_v22 = vadd.f32 %v332_v20, %v331_v16 }
  0xc5   : > { %v327_v26 = vrot.slane %v326_v21, 1  ;;  %v334_v23 = vrot.slane %v333_v22, 1 }
  0xc7   : > { %v328_v27 = vadd.f32 %v327_v26, %v326_v21  ;;  %v335_v28 = vadd.f32 %v334_v23, %v333_v22 }
  0xc9   : > { %v350_v31 = vmul.f32 %v338_v2, %v328_v27  ;;  %v351_v32 = vmul.f32 %v339_v3, %v335_v28 }
  0xcb   : > { %v352_v33 = vmul.f32 %v350_v31, %v348_v29  ;;  %v353_v34 = vmul.f32 %v351_v32, %v349_v30 }
  0xcd   : > { %v355_v35 = vsel %vm354_vm3, %v352_v33, 0.0  ;;  %v356_v36 = vsel %vm354_vm3, %v353_v34, 0.0 }
  0xce   : > { %v357_v37 = vadd.f32 %v356_v36, %v355_v35 }
  0xd0   : > { %358 = vadd.xlane.f32.xlu0 %v357_v37 }
 0x15d   : > { %v359_v38 = vpop.xlane.xlu0 %358 }
 0x15e   : > { %v360_v39 = vrot.slane %v359_v38, 4 }
 0x160   : > { %v361_v40 = vadd.f32 %v360_v39, %v359_v38 }
 0x162   : > { %v362_v41 = vrot.slane %v361_v40, 2 }
 0x164   : > { %v363_v42 = vadd.f32 %v362_v41, %v361_v40 }
 0x166   : > { %v364_v43 = vrot.slane %v363_v42, 1 }
 0x168   : > { %v365_v44 = vadd.f32 %v364_v43, %v363_v42 }
 0x16a   : > { %490 = vpush %v365_v44 }
 0x19b   : > { %s491_s29 = spop %490 }
 0x19c   : > { %v367_v45 = vstv %s491_s29 }
 0x19d   : > { %368 = vst [vmem:[%s227_s22] sm:$0x1] %v367_v45 }
 0x19e   : > { %610 = shalt.err (!%p607_p4)
}
 0x19f   : > { %s611_s5 = scalar_lea.hbm %s850_s7, 16  ;;  %s615_s10 = scalar_lea.hbm %s900_s3, 32 }
 0x1a0   : > { %p612_p10 = scmp.ne.s32.totalorder %s850_s7, %s611_s5  ;;  %p616_p2 = scmp.lt.u32.totalorder %s850_s7, %s900_s3 }
 0x1a1   : > { %p617_p5 = scmp.lt.u32.totalorder %s615_s10, %s611_s5  ;;  %p619_p9 = scmp.lt.u32.totalorder %s611_s5, %s850_s7 }
 0x1a2   : > { %p613_p12 = pnand %p612_p10, %p909_p11 }
 0x1a3   : > { %p618_p8 = por %p617_p5, %p616_p2 }
 0x1a4   : > { %p614_p1 = pneg %p613_p12 }
 0x1a5   : > { %p620_p0 = por %p619_p9, %p618_p8 }
 0x1a7   : > { %p621_p7 = pnand %p620_p0, %p614_p1 }
 0x1a9   : > { %624 = shalt.err (!%p621_p7)
}
 0x1aa   : > { %494 = dma.vmem_to_hbm [thread:$0]  (%p909_p11), %s845_s23, 16, %s850_s7, %s370_s11  }
 0x1ab PF: > { %s395_s22 = sand.u32 1, %s659_s12   ;;  %p910_p13 = scmp.ne.s32.totalorder %s905_s27, 0 }
 0x1ac   : > { %p911_p3 = scmp.ge.s32.totalorder %s679_s17, 2  ;;  %s396_s28 = scalar_lea.sflag [#allocation4], %s395_s22 }
 0x1ae   : > { %p501_p6 = pnand %p911_p3, %p910_p13 }
 0x1b0   : > { %654 = dma.done.wait (!%p501_p6), %s396_s28, 16  }
 0x1b1   : > { %656 = vsyncadd (!%p501_p6), %s396_s28, 4294967280  ;;  %s19_s17 = sadd.s32 1, %s679_s17   ;;  %s912_s12 = smov %s663_s13 }
 0x1b2   : > { %p16_p4 = scmp.ge.s32.totalorder %s19_s17, 4   ;;  %s913_s13 = smov %s667_s14 }
 0x1b3   : > { %s914_s14 = smov %s760_s26  ;;  %s915_s15 = smov %s675_s16 }
 0x1b4   : > { %s916_s16 = smov %s918_s20  ;;  %18 = sbr.rel (!%p16_p4) target bundleno = 6 (0x6), region = 80 }
 0x1bb   :  { %400 = vsyncpa [#allocation3], 1 }
 0x1bc   :  { %402 = vsyncpa [#allocation3 + $0x1], 1 }
 0x1bd   :  { %403 = vsyncpa [#allocation4], 1 }
 0x1be   :  { %405 = vsyncpa [#allocation4 + $0x1], 1 }

</bundles_post_ra>
